<compile_context>
chip_gen: v7x
topology: tpu7x:2x2x1
jax: 0.10.0
libtpu: 0.0.40
codegen_flags: <defaults>
</compile_context>

<pallas_src>
import functools

import jax
import jax.numpy as jnp
from jax import lax
from jax.experimental import pallas as pl
from jax.experimental.pallas import tpu as pltpu


def _shifted_dft(n: int) -> jnp.ndarray:
    """(n, n) complex DFT matrix, [output_bin, input_idx], with fftshift folded
    into the output bin (exact for the even sizes used here; a permutation
    applied identically to both spectra leaves the loss unchanged anyway)."""
    j = jnp.arange(n, dtype=jnp.float32)
    m = jnp.arange(n, dtype=jnp.float32) - float(n // 2)
    ang = -2.0 * jnp.pi * jnp.mod(jnp.outer(m, j), float(n)) / float(n)
    return jnp.cos(ang) + 1j * jnp.sin(ang)


def _spatial_dft_kernel(x_ref, cwt_ref, swt_ref, ch_ref, sh_ref,
                        re_ref, im_ref, *, t: int, h: int, w: int):
    """Per-axis DFT over the W (last) and H axes of (t, h, w)-shaped real data."""
    x = x_ref[...]                                               # (t*h, w) real
    # ---- W axis: plain 2-D MXU matmuls (real input -> complex) ----
    rw = jnp.dot(x, cwt_ref[...], preferred_element_type=jnp.float32)
    iw = jnp.dot(x, swt_ref[...], preferred_element_type=jnp.float32)
    # ---- H axis: batched matmul over the leading t rows ----
    # Layout-preserving split of the sublane dim (h is a multiple of 8).
    rw3 = rw.reshape(t, h, w)
    iw3 = iw.reshape(t, h, w)
    ch = jnp.broadcast_to(ch_ref[...], (t, h, h))                # [out, in]
    sh = jnp.broadcast_to(sh_ref[...], (t, h, h))
    dn = (((2,), (1,)), ((0,), (0,)))                            # 'tkh,thw->tkw'
    bmm = lambda a, b: lax.dot_general(a, b, dimension_numbers=dn,
                                       preferred_element_type=jnp.float32)
    re_ref[...] = bmm(ch, rw3) - bmm(sh, iw3)                    # (t, h, w)
    im_ref[...] = bmm(sh, rw3) + bmm(ch, iw3)


def _bc_dft_loss_kernel(re_ref, im_ref, lc_ref, ls_ref, loss_ref,
                        *, amplitude_weight: float, n_total: int, rows_per: int):
    """kron(W_B, W_C) DFT over the batch/channel rows + amplitude/phase L1 loss."""
    re_s = re_ref[...]                                           # (2*B*C, H*W)
    im_s = im_ref[...]
    lc = lc_ref[...]                                             # (2BC, 2BC) block-diag
    ls = ls_ref[...]
    re = (jnp.dot(lc, re_s, preferred_element_type=jnp.float32)
          - jnp.dot(ls, im_s, preferred_element_type=jnp.float32))
    im = (jnp.dot(lc, im_s, preferred_element_type=jnp.float32)
          + jnp.dot(ls, re_s, preferred_element_type=jnp.float32))
    amp = jnp.sqrt(re * re + im * im)            # torch.pow(re^2 + im^2, 0.5)
    ph = jnp.arctan2(im, re)                     # torch.atan2(imag, real)
    # Rows [0, rows_per) = input spectrum, rows [rows_per, 2*rows_per) = target.
    d = (amplitude_weight * jnp.abs(amp[:rows_per] - amp[rows_per:])
         + (1.0 - amplitude_weight) * jnp.abs(ph[:rows_per] - ph[rows_per:]))
    # Single fused weighted reduction; F.l1_loss(reduction='mean') -> divide by N.
    loss_ref[...] = jnp.sum(d, keepdims=True) * (1.0 / float(n_total))


def fourier_transform_loss(x, y, amplitude_weight: float = 0.5):
    assert x.shape == y.shape and x.ndim == 4, "expected NCHW inputs"
    b, c, h, w = (int(s) for s in x.shape)
    n_total = b * c * h * w
    t = 2 * b * c                    # {input, target} x (B*C) row batches

    # Per-axis fft-shifted DFT factors (a few KiB, deterministic "weights").
    d_w = _shifted_dft(w)                                        # [out, in]
    d_h = _shifted_dft(h)
    d_bc = jnp.kron(_shifted_dft(b), _shifted_dft(c))            # (B*C, B*C)
    l_blk = jnp.kron(jnp.eye(2, dtype=d_bc.dtype), d_bc)         # block-diag over {in, tgt}

    cwt = jnp.real(d_w).T.astype(jnp.float32)    # right-multiply form: [in, out]
    swt = jnp.imag(d_w).T.astype(jnp.float32)
    ch = jnp.real(d_h).astype(jnp.float32)       # batched-left form:   [out, in]
    sh = jnp.imag(d_h).astype(jnp.float32)
    lc = jnp.real(l_blk).astype(jnp.float32)
    ls = jnp.imag(l_blk).astype(jnp.float32)

    # Stack input & target: rows 0..B*C*H-1 = input, B*C*H.. = target.
    xy = jnp.stack([x, y], axis=0).astype(jnp.float32).reshape(t * h, w)

    def spec(shape):
        return pl.BlockSpec(shape, lambda i, _s=shape: (0,) * len(_s))

    # ---- Kernel A: separable spatial (W, H) DFT ----
    kern_a = functools.partial(_spatial_dft_kernel, t=t, h=h, w=w)
    re_s, im_s = pl.pallas_call(
        kern_a,
        out_shape=(jax.ShapeDtypeStruct((t, h, w), jnp.float32),
                   jax.ShapeDtypeStruct((t, h, w), jnp.float32)),
        grid_spec=pltpu.PrefetchScalarGridSpec(
            num_scalar_prefetch=0,
            grid=(1,),
            in_specs=[spec((t * h, w)), spec((w, w)), spec((w, w)),
                      spec((h, h)), spec((h, h))],
            out_specs=[spec((t, h, w)), spec((t, h, w))]),
        compiler_params=pltpu.CompilerParams(dimension_semantics=("arbitrary",)),
        cost_estimate=pl.CostEstimate(
            flops=4 * t * h * w * w + 8 * t * h * h * w,
            transcendentals=0,
            bytes_accessed=4 * (3 * t * h * w + 2 * w * w + 2 * h * h)),
    )(xy, cwt, swt, ch, sh)

    # ---- Kernel B: batch/channel DFT + amplitude/phase L1 loss ----
    re2 = re_s.reshape(t, h * w)     # wrapper-side reinterpretation (outside kernel)
    im2 = im_s.reshape(t, h * w)
    kern_b = functools.partial(_bc_dft_loss_kernel,
                               amplitude_weight=float(amplitude_weight),
                               n_total=int(n_total), rows_per=b * c)
    loss = pl.pallas_call(
        kern_b,
        out_shape=jax.ShapeDtypeStruct((1, 1), jnp.float32),
        grid_spec=pltpu.PrefetchScalarGridSpec(
            num_scalar_prefetch=0,
            grid=(1,),
            in_specs=[spec((t, h * w)), spec((t, h * w)),
                      spec((t, t)), spec((t, t))],
            out_specs=spec((1, 1))),
        compiler_params=pltpu.CompilerParams(dimension_semantics=("arbitrary",)),
        cost_estimate=pl.CostEstimate(
            flops=8 * t * t * h * w + 10 * t * h * w,
            transcendentals=3 * t * h * w,
            bytes_accessed=4 * (2 * t * h * w + 2 * t * t + 1)),
    )(re2, im2, lc, ls)
    return loss[0, 0]


def _reference_loss(x, y, amplitude_weight: float = 0.5):
    """Pure-JAX mirror of the PyTorch module, for a sanity check."""
    def ft(a):
        f = jnp.fft.fftshift(jnp.fft.fftn(a))
        amp = jnp.sqrt(jnp.real(f) ** 2 + jnp.imag(f) ** 2)
        ph = jnp.arctan2(jnp.imag(f), jnp.real(f))
        return amp, ph
    ai, pin = ft(x)
    at, ptg = ft(y)
    return (amplitude_weight * jnp.mean(jnp.abs(ai - at))
            + (1.0 - amplitude_weight) * jnp.mean(jnp.abs(pin - ptg)))


if __name__ == "__main__":
    key = jax.random.PRNGKey(0)
    k1, k2 = jax.random.split(key)
    # NCHW, matching the PyTorch convention.
    x = jax.random.normal(k1, (2, 4, 16, 16), dtype=jnp.float32)
    y = jax.random.normal(k2, (2, 4, 16, 16), dtype=jnp.float32)

    loss = fourier_transform_loss(x, y, amplitude_weight=0.5)
    loss = jax.block_until_ready(loss)

    ref = _reference_loss(x, y, 0.5)
    assert abs(float(loss) - float(ref)) <= 2e-2 * abs(float(ref)) + 1e-2, (
        float(loss), float(ref))

    print("KERNEL_OK")
</pallas_src>

<mosaic_0001>
module attributes {stable_mosaic.version = 11 : i64} {
  func.func @_spatial_dft_kernel(%arg0: i32, %arg1: memref<256x16xf32, #tpu.memory_space<vmem>>, %arg2: memref<16x16xf32, #tpu.memory_space<vmem>>, %arg3: memref<16x16xf32, #tpu.memory_space<vmem>>, %arg4: memref<16x16xf32, #tpu.memory_space<vmem>>, %arg5: memref<16x16xf32, #tpu.memory_space<vmem>>, %arg6: memref<16x16x16xf32, #tpu.memory_space<vmem>>, %arg7: memref<16x16x16xf32, #tpu.memory_space<vmem>>) attributes {dimension_semantics = [#tpu.dimension_semantics<arbitrary>], iteration_bounds = array<i64: 1>, scalar_prefetch = 0 : i64, scratch_operands = 0 : i64, tpu.core_type = #tpu.core_type<tc>, window_params = [{pipeline_mode = #tpu.pipeline_mode<synchronous>, transform_indices = @transform_0, window_bounds = array<i64: 256, 16>}, {pipeline_mode = #tpu.pipeline_mode<synchronous>, transform_indices = @transform_1, window_bounds = array<i64: 16, 16>}, {pipeline_mode = #tpu.pipeline_mode<synchronous>, transform_indices = @transform_2, window_bounds = array<i64: 16, 16>}, {pipeline_mode = #tpu.pipeline_mode<synchronous>, transform_indices = @transform_3, window_bounds = array<i64: 16, 16>}, {pipeline_mode = #tpu.pipeline_mode<synchronous>, transform_indices = @transform_4, window_bounds = array<i64: 16, 16>}, {pipeline_mode = #tpu.pipeline_mode<synchronous>, transform_indices = @transform_5, window_bounds = array<i64: 16, 16, 16>}, {pipeline_mode = #tpu.pipeline_mode<synchronous>, transform_indices = @transform_6, window_bounds = array<i64: 16, 16, 16>}]} {
    %c0 = arith.constant 0 : index
    %c0_0 = arith.constant 0 : index
    %0 = vector.load %arg1[%c0, %c0_0] : memref<256x16xf32, #tpu.memory_space<vmem>>, vector<256x16xf32>
    %c0_1 = arith.constant 0 : index
    %c0_2 = arith.constant 0 : index
    %1 = vector.load %arg2[%c0_1, %c0_2] : memref<16x16xf32, #tpu.memory_space<vmem>>, vector<16x16xf32>
    %cst = arith.constant dense<0.000000e+00> : vector<256x16xf32>
    %2 = tpu.matmul %0, %1, %cst {dimension_numbers = #tpu.dot_dimension_numbers<[1], [0], [0], [1], [0, 0, 1, 1], [], []>} : vector<256x16xf32>, vector<16x16xf32>, vector<256x16xf32> -> vector<256x16xf32>
    %c0_3 = arith.constant 0 : index
    %c0_4 = arith.constant 0 : index
    %3 = vector.load %arg3[%c0_3, %c0_4] : memref<16x16xf32, #tpu.memory_space<vmem>>, vector<16x16xf32>
    %cst_5 = arith.constant dense<0.000000e+00> : vector<256x16xf32>
    %4 = tpu.matmul %0, %3, %cst_5 {dimension_numbers = #tpu.dot_dimension_numbers<[1], [0], [0], [1], [0, 0, 1, 1], [], []>} : vector<256x16xf32>, vector<16x16xf32>, vector<256x16xf32> -> vector<256x16xf32>
    %5 = vector.shape_cast %2 : vector<256x16xf32> to vector<16x16x16xf32>
    %6 = vector.shape_cast %4 : vector<256x16xf32> to vector<16x16x16xf32>
    %c0_6 = arith.constant 0 : index
    %c0_7 = arith.constant 0 : index
    %7 = vector.load %arg4[%c0_6, %c0_7] : memref<16x16xf32, #tpu.memory_space<vmem>>, vector<16x16xf32>
    %8 = vector.shape_cast %7 : vector<16x16xf32> to vector<1x16x16xf32>
    %9 = vector.broadcast %8 : vector<1x16x16xf32> to vector<16x16x16xf32>
    %c0_8 = arith.constant 0 : index
    %c0_9 = arith.constant 0 : index
    %10 = vector.load %arg5[%c0_8, %c0_9] : memref<16x16xf32, #tpu.memory_space<vmem>>, vector<16x16xf32>
    %11 = vector.shape_cast %10 : vector<16x16xf32> to vector<1x16x16xf32>
    %12 = vector.broadcast %11 : vector<1x16x16xf32> to vector<16x16x16xf32>
    %cst_10 = arith.constant dense<0.000000e+00> : vector<16x16x16xf32>
    %13 = tpu.matmul %9, %5, %cst_10 {dimension_numbers = #tpu.dot_dimension_numbers<[2], [1], [1], [2], [0, 0, 0, 1, 1, 2], [0], [0]>} : vector<16x16x16xf32>, vector<16x16x16xf32>, vector<16x16x16xf32> -> vector<16x16x16xf32>
    %cst_11 = arith.constant dense<0.000000e+00> : vector<16x16x16xf32>
    %14 = tpu.matmul %12, %6, %cst_11 {dimension_numbers = #tpu.dot_dimension_numbers<[2], [1], [1], [2], [0, 0, 0, 1, 1, 2], [0], [0]>} : vector<16x16x16xf32>, vector<16x16x16xf32>, vector<16x16x16xf32> -> vector<16x16x16xf32>
    %15 = arith.subf %13, %14 : vector<16x16x16xf32>
    %c0_12 = arith.constant 0 : index
    %c0_13 = arith.constant 0 : index
    %c0_14 = arith.constant 0 : index
    %16 = vector.load %arg6[%c0_12, %c0_13, %c0_14] : memref<16x16x16xf32, #tpu.memory_space<vmem>>, vector<16x16x16xf32>
    tpu.vector_store %arg6[%c0_12, %c0_13, %c0_14], %15 {strides = array<i32>} : memref<16x16x16xf32, #tpu.memory_space<vmem>>, vector<16x16x16xf32>,
    %cst_15 = arith.constant dense<0.000000e+00> : vector<16x16x16xf32>
    %17 = tpu.matmul %12, %5, %cst_15 {dimension_numbers = #tpu.dot_dimension_numbers<[2], [1], [1], [2], [0, 0, 0, 1, 1, 2], [0], [0]>} : vector<16x16x16xf32>, vector<16x16x16xf32>, vector<16x16x16xf32> -> vector<16x16x16xf32>
    %cst_16 = arith.constant dense<0.000000e+00> : vector<16x16x16xf32>
    %18 = tpu.matmul %9, %6, %cst_16 {dimension_numbers = #tpu.dot_dimension_numbers<[2], [1], [1], [2], [0, 0, 0, 1, 1, 2], [0], [0]>} : vector<16x16x16xf32>, vector<16x16x16xf32>, vector<16x16x16xf32> -> vector<16x16x16xf32>
    %19 = arith.addf %17, %18 : vector<16x16x16xf32>
    %c0_17 = arith.constant 0 : index
    %c0_18 = arith.constant 0 : index
    %c0_19 = arith.constant 0 : index
    %20 = vector.load %arg7[%c0_17, %c0_18, %c0_19] : memref<16x16x16xf32, #tpu.memory_space<vmem>>, vector<16x16x16xf32>
    tpu.vector_store %arg7[%c0_17, %c0_18, %c0_19], %19 {strides = array<i32>} : memref<16x16x16xf32, #tpu.memory_space<vmem>>, vector<16x16x16xf32>,
    return
  }
  func.func @transform_0(%arg0: i32) -> (i32, i32) {
    %c0_i32 = arith.constant 0 : i32
    %c0_i32_0 = arith.constant 0 : i32
    %c0_i32_1 = arith.constant 0 : i32
    return %c0_i32, %c0_i32_0 : i32, i32
  }
  func.func @transform_1(%arg0: i32) -> (i32, i32) {
    %c0_i32 = arith.constant 0 : i32
    %c0_i32_0 = arith.constant 0 : i32
    %c0_i32_1 = arith.constant 0 : i32
    return %c0_i32, %c0_i32_0 : i32, i32
  }
  func.func @transform_2(%arg0: i32) -> (i32, i32) {
    %c0_i32 = arith.constant 0 : i32
    %c0_i32_0 = arith.constant 0 : i32
    %c0_i32_1 = arith.constant 0 : i32
    return %c0_i32, %c0_i32_0 : i32, i32
  }
  func.func @transform_3(%arg0: i32) -> (i32, i32) {
    %c0_i32 = arith.constant 0 : i32
    %c0_i32_0 = arith.constant 0 : i32
    %c0_i32_1 = arith.constant 0 : i32
    return %c0_i32, %c0_i32_0 : i32, i32
  }
  func.func @transform_4(%arg0: i32) -> (i32, i32) {
    %c0_i32 = arith.constant 0 : i32
    %c0_i32_0 = arith.constant 0 : i32
    %c0_i32_1 = arith.constant 0 : i32
    return %c0_i32, %c0_i32_0 : i32, i32
  }
  func.func @transform_5(%arg0: i32) -> (i32, i32, i32) {
    %c0_i32 = arith.constant 0 : i32
    %c0_i32_0 = arith.constant 0 : i32
    %c0_i32_1 = arith.constant 0 : i32
    %c0_i32_2 = arith.constant 0 : i32
    return %c0_i32, %c0_i32_0, %c0_i32_1 : i32, i32, i32
  }
  func.func @transform_6(%arg0: i32) -> (i32, i32, i32) {
    %c0_i32 = arith.constant 0 : i32
    %c0_i32_0 = arith.constant 0 : i32
    %c0_i32_1 = arith.constant 0 : i32
    %c0_i32_2 = arith.constant 0 : i32
    return %c0_i32, %c0_i32_0, %c0_i32_1 : i32, i32, i32
  }
}

</mosaic_0001>

<bundles_post_ra>
// kernel: tpu_custom_call.1
= control target key start
LH: loop header
LB: loop body
LE: loop exit
PB: predicated region body
PF: predicated region fallthrough
CT: control target
= control target key end

     0   :  { %12 = vsyncpa [#allocation3], 0  ;;  %vm58_vm0 = vcmask 130048   ;;  %s7794_s0 = inlined_call_operand.vmem [shape: f32[256,16], index: 0, kind: input, shape index: {}]   ;;  %s7795_s1 = inlined_call_operand.vmem [shape: f32[16,16], index: 1, kind: input, shape index: {}]   ;;  %s7796_s2 = inlined_call_operand.vmem [shape: f32[16,16], index: 2, kind: input, shape index: {}]   ;;  %s7797_s3 = inlined_call_operand.vmem [shape: f32[16,16], index: 3, kind: input, shape index: {}]   ;;  %s7798_s4 = inlined_call_operand.vmem [shape: f32[16,16], index: 4, kind: input, shape index: {}]   ;;  %s7799_s5 = inlined_call_operand.hbm [shape: f32[16,16,16], index: 5, kind: output, shape index: {0}]   ;;  %s7800_s6 = inlined_call_operand.hbm [shape: f32[16,16,16], index: 6, kind: output, shape index: {1}]  }
   0x1   :  { %v56_v0 = vld [vmem:[%s7795_s1] sm:$0xff]  ;;  %v57_v1 = vld [vmem:[%s7795_s1 + $0x8] sm:$0xff]  ;;  %v26_v5 = vld [vmem:[%s7794_s0 + $0x10] sm:$0xff] }
   0x2   :  { %v24_v2 = vld [vmem:[%s7794_s0] sm:$0xff]  ;;  %v6619_v3 = vpack.c.bf16 %v57_v1, %v56_v0  ;;  %v25_v4 = vld [vmem:[%s7794_s0 + $0x8] sm:$0xff]  ;;  %v27_v9 = vld [vmem:[%s7794_s0 + $0x18] sm:$0xff] }
   0x3   :  { %6071 = vmatprep.mubr.msk.f32.mxu0 %vm58_vm0, %v24_v2  ;;  %6123 = vmatprep.mubr.msk.f32.mxu1 %vm58_vm0, %v24_v2  ;;  %v380_v6 = vld [vmem:[%s7796_s2] sm:$0xff]  ;;  %v381_v7 = vld [vmem:[%s7796_s2 + $0x8] sm:$0xff] }
   0x4   :  { %6620 = vmatprep.subr.bf16.mxu0 %v6619_v3  ;;  %v6623_v8 = vpack.c.bf16 %v381_v7, %v380_v6  ;;  %v28_v10 = vld [vmem:[%s7794_s0 + $0x20] sm:$0xff]  ;;  %v29_v11 = vld [vmem:[%s7794_s0 + $0x28] sm:$0xff] }
   0x5   :  { %6622 = vmatpush3.bf16.msra.mxu0 %v6619_v3 }
   0x6   :  { %6624 = vmatprep.subr.bf16.mxu1 %v6623_v8 }
   0x7   :  { %6626 = vmatpush3.bf16.msra.mxu1 %v6623_v8 }
   0x8   :  { %6072 = vmatmul.mubr.msk.f32.vlgmr.msra.gmra.mrb[0].mxu0 %vm58_vm0, %v25_v4 }
   0x9   :  { %6074 = vmatprep.mubr.msk.f32.mxu0 %vm58_vm0, %v26_v5 }
   0xc   :  { %6075 = vmatmul.mubr.msk.f32.gmra.mrb[2].mxu0 %vm58_vm0, %v27_v9 }
   0xd   :  { %6077 = vmatprep.mubr.msk.f32.mxu0 %vm58_vm0, %v28_v10 }
   0xe   :  { %13 = vsyncpa [#allocation5], 0  ;;  %v30_v12 = vld [vmem:[%s7794_s0 + $0x30] sm:$0xff]  ;;  %6124 = vmatmul.mubr.msk.f32.vlgmr.msra.gmra.mrb[0].mxu1 %vm58_vm0, %v25_v4  ;;  %v31_v13 = vld [vmem:[%s7794_s0 + $0x38] sm:$0xff] }
   0xf   :  { %6126 = vmatprep.mubr.msk.f32.mxu1 %vm58_vm0, %v26_v5  ;;  %v32_v14 = vld [vmem:[%s7794_s0 + $0x40] sm:$0xff]  ;;  %v33_v15 = vld [vmem:[%s7794_s0 + $0x48] sm:$0xff]  ;;  %v34_v16 = vld [vmem:[%s7794_s0 + $0x50] sm:$0xff] }
  0x10   :  { %6078 = vmatmul.mubr.msk.f32.gmra.mrb[4].mxu0 %vm58_vm0, %v29_v11  ;;  %v35_v17 = vld [vmem:[%s7794_s0 + $0x58] sm:$0xff]  ;;  %v36_v18 = vld [vmem:[%s7794_s0 + $0x60] sm:$0xff]  ;;  %v37_v19 = vld [vmem:[%s7794_s0 + $0x68] sm:$0xff] }
  0x11   :  { %6080 = vmatprep.mubr.msk.f32.mxu0 %vm58_vm0, %v30_v12  ;;  %v38_v20 = vld [vmem:[%s7794_s0 + $0x70] sm:$0xff]  ;;  %v39_v21 = vld [vmem:[%s7794_s0 + $0x78] sm:$0xff]  ;;  %v40_v22 = vld [vmem:[%s7794_s0 + $0x80] sm:$0xff] }
  0x12   :  { %6127 = vmatmul.mubr.msk.f32.gmra.mrb[2].mxu1 %vm58_vm0, %v27_v9  ;;  %v41_v23 = vld [vmem:[%s7794_s0 + $0x88] sm:$0xff]  ;;  %v42_v24 = vld [vmem:[%s7794_s0 + $0x90] sm:$0xff]  ;;  %v43_v25 = vld [vmem:[%s7794_s0 + $0x98] sm:$0xff] }
  0x13   :  { %6129 = vmatprep.mubr.msk.f32.mxu1 %vm58_vm0, %v28_v10  ;;  %v44_v26 = vld [vmem:[%s7794_s0 + $0xa0] sm:$0xff]  ;;  %v45_v27 = vld [vmem:[%s7794_s0 + $0xa8] sm:$0xff]  ;;  %v46_v28 = vld [vmem:[%s7794_s0 + $0xb0] sm:$0xff] }
  0x14   :  { %6081 = vmatmul.mubr.msk.f32.gmra.mrb[6].mxu0 %vm58_vm0, %v31_v13  ;;  %v47_v29 = vld [vmem:[%s7794_s0 + $0xb8] sm:$0xff]  ;;  %v48_v30 = vld [vmem:[%s7794_s0 + $0xc0] sm:$0xff]  ;;  %v49_v31 = vld [vmem:[%s7794_s0 + $0xc8] sm:$0xff] }
  0x15   :  { %6083 = vmatprep.mubr.msk.f32.mxu0 %vm58_vm0, %v32_v14  ;;  %v50_v32 = vld [vmem:[%s7794_s0 + $0xd0] sm:$0xff]  ;;  %v51_v33 = vld [vmem:[%s7794_s0 + $0xd8] sm:$0xff]  ;;  %v52_v34 = vld [vmem:[%s7794_s0 + $0xe0] sm:$0xff] }
  0x16   :  { %6130 = vmatmul.mubr.msk.f32.gmra.mrb[4].mxu1 %vm58_vm0, %v29_v11  ;;  %v53_v35 = vld [vmem:[%s7794_s0 + $0xe8] sm:$0xff]  ;;  %v54_v36 = vld [vmem:[%s7794_s0 + $0xf0] sm:$0xff]  ;;  %v55_v37 = vld [vmem:[%s7794_s0 + $0xf8] sm:$0xff] }
  0x17   :  { %6132 = vmatprep.mubr.msk.f32.mxu1 %vm58_vm0, %v30_v12  ;;  %v7181_v38 = vld [vmem:[%s7797_s3] sm:$0xff]  ;;  %v7194_v44 = vld [vmem:[%s7797_s3 + $0x8] sm:$0xff] }
  0x18   :  { %6084 = vmatmul.mubr.msk.f32.gmra.mrb[8].mxu0 %vm58_vm0, %v33_v15 }
  0x19   :  { %6086 = vmatprep.mubr.msk.f32.mxu0 %vm58_vm0, %v34_v16 }
  0x1a   :  { %6133 = vmatmul.mubr.msk.f32.gmra.mrb[6].mxu1 %vm58_vm0, %v31_v13 }
  0x1b   :  { %6135 = vmatprep.mubr.msk.f32.mxu1 %vm58_vm0, %v32_v14 }
  0x1c   :  { %6087 = vmatmul.mubr.msk.f32.gmra.mrb[10].mxu0 %vm58_vm0, %v35_v17 }
  0x1d   :  { %6089 = vmatprep.mubr.msk.f32.mxu0 %vm58_vm0, %v36_v18 }
  0x1e   :  { %6136 = vmatmul.mubr.msk.f32.gmra.mrb[8].mxu1 %vm58_vm0, %v33_v15 }
  0x1f   :  { %6138 = vmatprep.mubr.msk.f32.mxu1 %vm58_vm0, %v34_v16 }
  0x20   :  { %6090 = vmatmul.mubr.msk.f32.gmra.mrb[12].mxu0 %vm58_vm0, %v37_v19 }
  0x21   :  { %6092 = vmatprep.mubr.msk.f32.mxu0 %vm58_vm0, %v38_v20 }
  0x22   :  { %6139 = vmatmul.mubr.msk.f32.gmra.mrb[10].mxu1 %vm58_vm0, %v35_v17 }
  0x23   :  { %6141 = vmatprep.mubr.msk.f32.mxu1 %vm58_vm0, %v36_v18 }
  0x24   :  { %6093 = vmatmul.mubr.msk.f32.gmra.mrb[14].mxu0 %vm58_vm0, %v39_v21 }
  0x25   :  { %6095 = vmatprep.mubr.msk.f32.mxu0 %vm58_vm0, %v40_v22 }
  0x26   :  { %6142 = vmatmul.mubr.msk.f32.gmra.mrb[12].mxu1 %vm58_vm0, %v37_v19 }
  0x27   :  { %6144 = vmatprep.mubr.msk.f32.mxu1 %vm58_vm0, %v38_v20 }
  0x28   :  { %6096 = vmatmul.mubr.msk.f32.gmra.mrb[16].mxu0 %vm58_vm0, %v41_v23 }
  0x29   :  { %6098 = vmatprep.mubr.msk.f32.mxu0 %vm58_vm0, %v42_v24 }
  0x2a   :  { %6145 = vmatmul.mubr.msk.f32.gmra.mrb[14].mxu1 %vm58_vm0, %v39_v21 }
  0x2b   :  { %6147 = vmatprep.mubr.msk.f32.mxu1 %vm58_vm0, %v40_v22 }
  0x2c   :  { %6099 = vmatmul.mubr.msk.f32.gmra.mrb[18].mxu0 %vm58_vm0, %v43_v25 }
  0x2d   :  { %6101 = vmatprep.mubr.msk.f32.mxu0 %vm58_vm0, %v44_v26 }
  0x2e   :  { %6148 = vmatmul.mubr.msk.f32.gmra.mrb[16].mxu1 %vm58_vm0, %v41_v23 }
  0x2f   :  { %6150 = vmatprep.mubr.msk.f32.mxu1 %vm58_vm0, %v42_v24 }
  0x30   :  { %6102 = vmatmul.mubr.msk.f32.gmra.mrb[20].mxu0 %vm58_vm0, %v45_v27 }
  0x31   :  { %6104 = vmatprep.mubr.msk.f32.mxu0 %vm58_vm0, %v46_v28 }
  0x32   :  { %6151 = vmatmul.mubr.msk.f32.gmra.mrb[18].mxu1 %vm58_vm0, %v43_v25 }
  0x33   :  { %6153 = vmatprep.mubr.msk.f32.mxu1 %vm58_vm0, %v44_v26 }
  0x34   :  { %6105 = vmatmul.mubr.msk.f32.gmra.mrb[22].mxu0 %vm58_vm0, %v47_v29 }
  0x35   :  { %6107 = vmatprep.mubr.msk.f32.mxu0 %vm58_vm0, %v48_v30 }
  0x36   :  { %6154 = vmatmul.mubr.msk.f32.gmra.mrb[20].mxu1 %vm58_vm0, %v45_v27 }
  0x37   :  { %6156 = vmatprep.mubr.msk.f32.mxu1 %vm58_vm0, %v46_v28 }
  0x38   :  { %6108 = vmatmul.mubr.msk.f32.gmra.mrb[24].mxu0 %vm58_vm0, %v49_v31 }
  0x39   :  { %6110 = vmatprep.mubr.msk.f32.mxu0 %vm58_vm0, %v50_v32 }
  0x3a   :  { %6157 = vmatmul.mubr.msk.f32.gmra.mrb[22].mxu1 %vm58_vm0, %v47_v29 }
  0x3b   :  { %6159 = vmatprep.mubr.msk.f32.mxu1 %vm58_vm0, %v48_v30 }
  0x3c   :  { %6111 = vmatmul.mubr.msk.f32.gmra.mrb[26].mxu0 %vm58_vm0, %v51_v33 }
  0x3d   :  { %6113 = vmatprep.mubr.msk.f32.mxu0 %vm58_vm0, %v52_v34 }
  0x3e   :  { %6160 = vmatmul.mubr.msk.f32.gmra.mrb[24].mxu1 %vm58_vm0, %v49_v31 }
  0x3f   :  { %6162 = vmatprep.mubr.msk.f32.mxu1 %vm58_vm0, %v50_v32 }
  0x40   :  { %6114 = vmatmul.mubr.msk.f32.gmra.mrb[28].mxu0 %vm58_vm0, %v53_v35 }
  0x41   :  { %6116 = vmatprep.mubr.msk.f32.mxu0 %vm58_vm0, %v54_v36 }
  0x42   :  { %6163 = vmatmul.mubr.msk.f32.gmra.mrb[26].mxu1 %vm58_vm0, %v51_v33 }
  0x43   :  { %6165 = vmatprep.mubr.msk.f32.mxu1 %vm58_vm0, %v52_v34 }
  0x44   :  { %6117 = vmatmul.mubr.msk.f32.gmra.mrb[30].mxu0 %vm58_vm0, %v55_v37 }
  0x45   :  { %6175 = vmatprep.mubr.msk.f32.mxu0 %vm58_vm0, %v7181_v38 }
  0x46   :  { %6166 = vmatmul.mubr.msk.f32.gmra.mrb[28].mxu1 %vm58_vm0, %v53_v35 }
  0x47   :  { %6168 = vmatprep.mubr.msk.f32.mxu1 %vm58_vm0, %v54_v36 }
  0x4a   :  { %6169 = vmatmul.mubr.msk.f32.gmra.mrb[30].mxu1 %vm58_vm0, %v55_v37 }
  0x4b   :  { %6182 = vmatprep.mubr.msk.f32.mxu1 %vm58_vm0, %v7181_v38 }
  0xdb   :  { %v6073_v39 = vpop.f32.mrb[0].mxu0 }
  0xdc   :  { %v221_v40 = vpop.f32.mrb[1].mxu0 }
  0xdd   :  { %v7187_v41 = vpack.c.bf16 %v6073_v39, %v221_v40 }
  0xdf   :  { %v6076_v42 = vpop.f32.mrb[2].mxu0  ;;  %6628 = vmatprep.subr.bf16.mxu0 %v7187_v41 }
  0xe0   :  { %v231_v43 = vpop.f32.mrb[3].mxu0  ;;  %6630 = vmatpush3.bf16.msra.mxu0 %v7187_v41 }
  0xe1   :  { %v7196_v45 = vpack.c.bf16 %v6076_v42, %v231_v43  ;;  %v6125_v46 = vpop.f32.mrb[0].mxu1 }
  0xe2   :  { %v448_v47 = vpop.f32.mrb[1].mxu1 }
  0xe3   :  { %6632 = vmatprep.subr.bf16.mxu1 %v7196_v45  ;;  %v6079_v48 = vpop.f32.mrb[4].mxu0  ;;  %6176 = vmatmul.mubr.msk.f32.vlgmr.msra.gmra.mrb[32].mxu0 %vm58_vm0, %v7194_v44  ;;  %v7201_v49 = vpack.c.bf16 %v6125_v46, %v448_v47 }
  0xe4   :  { %6634 = vmatpush3.bf16.msra.mxu1 %v7196_v45  ;;  %v241_v50 = vpop.f32.mrb[5].mxu0  ;;  %6189 = vmatprep.mubr.msk.f32.mxu0 %vm58_vm0, %v7181_v38 }
  0xe5   :  { %v7206_v51 = vpack.c.bf16 %v6079_v48, %v241_v50  ;;  %v6128_v52 = vpop.f32.mrb[2].mxu1 }
  0xe6   :  { %v458_v53 = vpop.f32.mrb[3].mxu1 }
  0xe7   :  { %v6082_v54 = vpop.f32.mrb[6].mxu0  ;;  %6636 = vmatprep.subr.bf16.mxu0 %v7206_v51  ;;  %6183 = vmatmul.mubr.msk.f32.vlgmr.msra.gmra.mrb[32].mxu1 %vm58_vm0, %v7194_v44  ;;  %v7211_v55 = vpack.c.bf16 %v6128_v52, %v458_v53 }
  0xe8   :  { %v251_v56 = vpop.f32.mrb[7].mxu0  ;;  %6638 = vmatpush3.bf16.msra.mxu0 %v7206_v51  ;;  %6196 = vmatprep.mubr.msk.f32.mxu1 %vm58_vm0, %v7181_v38 }
  0xe9   :  { %v7216_v57 = vpack.c.bf16 %v6082_v54, %v251_v56  ;;  %v6131_v58 = vpop.f32.mrb[4].mxu1 }
  0xea   :  { %v468_v59 = vpop.f32.mrb[5].mxu1 }
  0xeb   :  { %v6085_v60 = vpop.f32.mrb[8].mxu0  ;;  %6640 = vmatprep.subr.bf16.mxu1 %v7216_v57  ;;  %6190 = vmatmul.mubr.msk.f32.vlgmr.msra.gmra.mrb[34].mxu0 %vm58_vm0, %v7194_v44  ;;  %v7221_v61 = vpack.c.bf16 %v6131_v58, %v468_v59 }
  0xec   :  { %v261_v62 = vpop.f32.mrb[9].mxu0  ;;  %6642 = vmatpush3.bf16.msra.mxu1 %v7216_v57  ;;  %6203 = vmatprep.mubr.msk.f32.mxu0 %vm58_vm0, %v7181_v38 }
  0xed   :  { %v7226_v63 = vpack.c.bf16 %v6085_v60, %v261_v62  ;;  %v6134_v0 = vpop.f32.mrb[6].mxu1 }
  0xee   :  { %v478_v1 = vpop.f32.mrb[7].mxu1 }
  0xef   :  { %v6088_v2 = vpop.f32.mrb[10].mxu0  ;;  %6644 = vmatprep.subr.bf16.mxu0 %v7226_v63  ;;  %6197 = vmatmul.mubr.msk.f32.vlgmr.msra.gmra.mrb[34].mxu1 %vm58_vm0, %v7194_v44  ;;  %v7231_v3 = vpack.c.bf16 %v6134_v0, %v478_v1 }
  0xf0   :  { %v271_v4 = vpop.f32.mrb[11].mxu0  ;;  %6646 = vmatpush3.bf16.msra.mxu0 %v7226_v63  ;;  %6210 = vmatprep.mubr.msk.f32.mxu1 %vm58_vm0, %v7181_v38 }
  0xf1   :  { %v7236_v5 = vpack.c.bf16 %v6088_v2, %v271_v4  ;;  %v6137_v6 = vpop.f32.mrb[8].mxu1 }
  0xf2   :  { %v488_v7 = vpop.f32.mrb[9].mxu1 }
  0xf3   :  { %v6091_v8 = vpop.f32.mrb[12].mxu0  ;;  %6648 = vmatprep.subr.bf16.mxu1 %v7236_v5  ;;  %6204 = vmatmul.mubr.msk.f32.vlgmr.msra.gmra.mrb[36].mxu0 %vm58_vm0, %v7194_v44  ;;  %v7241_v9 = vpack.c.bf16 %v6137_v6, %v488_v7 }
  0xf4   :  { %v281_v10 = vpop.f32.mrb[13].mxu0  ;;  %6650 = vmatpush3.bf16.msra.mxu1 %v7236_v5  ;;  %6217 = vmatprep.mubr.msk.f32.mxu0 %vm58_vm0, %v7181_v38 }
  0xf5   :  { %v7246_v11 = vpack.c.bf16 %v6091_v8, %v281_v10  ;;  %v6140_v12 = vpop.f32.mrb[10].mxu1 }
  0xf6   :  { %v498_v13 = vpop.f32.mrb[11].mxu1 }
  0xf7   :  { %v6094_v14 = vpop.f32.mrb[14].mxu0  ;;  %6652 = vmatprep.subr.bf16.mxu0 %v7246_v11  ;;  %6211 = vmatmul.mubr.msk.f32.vlgmr.msra.gmra.mrb[36].mxu1 %vm58_vm0, %v7194_v44  ;;  %v7251_v15 = vpack.c.bf16 %v6140_v12, %v498_v13 }
  0xf8   :  { %v291_v16 = vpop.f32.mrb[15].mxu0  ;;  %6654 = vmatpush3.bf16.msra.mxu0 %v7246_v11  ;;  %6224 = vmatprep.mubr.msk.f32.mxu1 %vm58_vm0, %v7181_v38 }
  0xf9   :  { %v7256_v17 = vpack.c.bf16 %v6094_v14, %v291_v16  ;;  %v6143_v18 = vpop.f32.mrb[12].mxu1 }
  0xfa   :  { %v508_v19 = vpop.f32.mrb[13].mxu1 }
  0xfb   :  { %v6097_v20 = vpop.f32.mrb[16].mxu0  ;;  %6656 = vmatprep.subr.bf16.mxu1 %v7256_v17  ;;  %6218 = vmatmul.mubr.msk.f32.vlgmr.msra.gmra.mrb[38].mxu0 %vm58_vm0, %v7194_v44  ;;  %v7261_v21 = vpack.c.bf16 %v6143_v18, %v508_v19  ;;  %v7342_v19 = vld [vmem:[%s7798_s4] sm:$0xff] }
  0xfc   :  { %v301_v22 = vpop.f32.mrb[17].mxu0  ;;  %6658 = vmatpush3.bf16.msra.mxu1 %v7256_v17  ;;  %6231 = vmatprep.mubr.msk.f32.mxu0 %vm58_vm0, %v7181_v38 }
  0xfd   :  { %v7266_v23 = vpack.c.bf16 %v6097_v20, %v301_v22  ;;  %v6146_v24 = vpop.f32.mrb[14].mxu1 }
  0xfe   :  { %v518_v25 = vpop.f32.mrb[15].mxu1 }
  0xff   :  { %v6100_v26 = vpop.f32.mrb[18].mxu0  ;;  %6660 = vmatprep.subr.bf16.mxu0 %v7266_v23  ;;  %6225 = vmatmul.mubr.msk.f32.vlgmr.msra.gmra.mrb[38].mxu1 %vm58_vm0, %v7194_v44  ;;  %v7271_v27 = vpack.c.bf16 %v6146_v24, %v518_v25  ;;  %v7354_v24 = vld [vmem:[%s7798_s4 + $0x8] sm:$0xff]  ;;  %s6967_s4 = smov [#allocation2]  }
 0x100   :  { %v311_v28 = vpop.f32.mrb[19].mxu0  ;;  %6662 = vmatpush3.bf16.msra.mxu0 %v7266_v23  ;;  %6238 = vmatprep.mubr.msk.f32.mxu1 %vm58_vm0, %v7181_v38  ;;  %s5524_s21 = sshll.u32 %s6967_s4, 4  ;;  %s5525_s21 = int_to_ptr.vmem [resolvable:$true] %s5524_s21 }
 0x101   :  { %v7276_v29 = vpack.c.bf16 %v6100_v26, %v311_v28  ;;  %v6149_v30 = vpop.f32.mrb[16].mxu1  ;;  %s6919_s22 = scalar_lea.vmem %s5525_s21, 4096  ;;  %p6924_p1 = scmp.lt.s32.totalorder %s5525_s21, %s5525_s21 }
 0x102   :  { %v528_v31 = vpop.f32.mrb[17].mxu1  ;;  %p6920_p0 = scmp.ne.s32.totalorder %s5525_s21, %s6919_s22  ;;  %p6925_p2 = scmp.lt.s32.totalorder %s6919_s22, %s6919_s22 }
 0x103   :  { %v6103_v32 = vpop.f32.mrb[20].mxu0  ;;  %6664 = vmatprep.subr.bf16.mxu1 %v7276_v29  ;;  %6232 = vmatmul.mubr.msk.f32.vlgmr.msra.gmra.mrb[40].mxu0 %vm58_vm0, %v7194_v44  ;;  %v7281_v33 = vpack.c.bf16 %v6149_v30, %v528_v31 }
 0x104   :  { %v321_v34 = vpop.f32.mrb[21].mxu0  ;;  %6666 = vmatpush3.bf16.msra.mxu1 %v7276_v29  ;;  %6245 = vmatprep.mubr.msk.f32.mxu0 %vm58_vm0, %v7181_v38  ;;  %p6926_p3 = por %p6925_p2, %p6924_p1 }
 0x105   :  { %v7286_v35 = vpack.c.bf16 %v6103_v32, %v321_v34  ;;  %v6152_v36 = vpop.f32.mrb[18].mxu1 }
 0x106   :  { %v538_v37 = vpop.f32.mrb[19].mxu1  ;;  %p6927_p4 = pnand %p6926_p3, %p6920_p0 }
 0x107   :  { %v6106_v39 = vpop.f32.mrb[22].mxu0  ;;  %6668 = vmatprep.subr.bf16.mxu0 %v7286_v35  ;;  %6239 = vmatmul.mubr.msk.f32.vlgmr.msra.gmra.mrb[40].mxu1 %vm58_vm0, %v7194_v44  ;;  %v7291_v40 = vpack.c.bf16 %v6152_v36, %v538_v37 }
 0x108   :  { %v331_v42 = vpop.f32.mrb[23].mxu0  ;;  %6670 = vmatpush3.bf16.msra.mxu0 %v7286_v35  ;;  %6252 = vmatprep.mubr.msk.f32.mxu1 %vm58_vm0, %v7181_v38 }
 0x109   :  { %v7296_v43 = vpack.c.bf16 %v6106_v39, %v331_v42  ;;  %v6155_v46 = vpop.f32.mrb[20].mxu1 }
 0x10a   :  { %v548_v47 = vpop.f32.mrb[21].mxu1 }
 0x10b   :  { %v6109_v48 = vpop.f32.mrb[24].mxu0  ;;  %6672 = vmatprep.subr.bf16.mxu1 %v7296_v43  ;;  %6246 = vmatmul.mubr.msk.f32.vlgmr.msra.gmra.mrb[42].mxu0 %vm58_vm0, %v7194_v44  ;;  %v7301_v50 = vpack.c.bf16 %v6155_v46, %v548_v47 }
 0x10c   :  { %v341_v52 = vpop.f32.mrb[25].mxu0  ;;  %6674 = vmatpush3.bf16.msra.mxu1 %v7296_v43  ;;  %6259 = vmatprep.mubr.msk.f32.mxu0 %vm58_vm0, %v7181_v38 }
 0x10d   :  { %v7306_v53 = vpack.c.bf16 %v6109_v48, %v341_v52  ;;  %v6158_v54 = vpop.f32.mrb[22].mxu1 }
 0x10e   :  { %v558_v56 = vpop.f32.mrb[23].mxu1 }
 0x10f   :  { %v6112_v58 = vpop.f32.mrb[26].mxu0  ;;  %6676 = vmatprep.subr.bf16.mxu0 %v7306_v53  ;;  %6253 = vmatmul.mubr.msk.f32.vlgmr.msra.gmra.mrb[42].mxu1 %vm58_vm0, %v7194_v44  ;;  %v7311_v59 = vpack.c.bf16 %v6158_v54, %v558_v56 }
 0x110   :  { %v351_v60 = vpop.f32.mrb[27].mxu0  ;;  %6678 = vmatpush3.bf16.msra.mxu0 %v7306_v53  ;;  %6266 = vmatprep.mubr.msk.f32.mxu1 %vm58_vm0, %v7181_v38 }
 0x111   :  { %v7316_v62 = vpack.c.bf16 %v6112_v58, %v351_v60  ;;  %v6161_v0 = vpop.f32.mrb[24].mxu1 }
 0x112   :  { %v568_v1 = vpop.f32.mrb[25].mxu1 }
 0x113   :  { %v6115_v2 = vpop.f32.mrb[28].mxu0  ;;  %6680 = vmatprep.subr.bf16.mxu1 %v7316_v62  ;;  %6260 = vmatmul.mubr.msk.f32.vlgmr.msra.gmra.mrb[44].mxu0 %vm58_vm0, %v7194_v44  ;;  %v7321_v4 = vpack.c.bf16 %v6161_v0, %v568_v1 }
 0x114   :  { %v361_v6 = vpop.f32.mrb[29].mxu0  ;;  %6682 = vmatpush3.bf16.msra.mxu1 %v7316_v62  ;;  %6273 = vmatprep.mubr.msk.f32.mxu0 %vm58_vm0, %v7181_v38 }
 0x115   :  { %v7326_v7 = vpack.c.bf16 %v6115_v2, %v361_v6  ;;  %v6164_v8 = vpop.f32.mrb[26].mxu1 }
 0x116   :  { %v578_v10 = vpop.f32.mrb[27].mxu1 }
 0x117   :  { %v6118_v12 = vpop.f32.mrb[30].mxu0  ;;  %6684 = vmatprep.subr.bf16.mxu0 %v7326_v7  ;;  %6267 = vmatmul.mubr.msk.f32.vlgmr.msra.gmra.mrb[44].mxu1 %vm58_vm0, %v7194_v44  ;;  %v7331_v13 = vpack.c.bf16 %v6164_v8, %v578_v10 }
 0x118   :  { %v371_v14 = vpop.f32.mrb[31].mxu0  ;;  %6686 = vmatpush3.bf16.msra.mxu0 %v7326_v7  ;;  %6280 = vmatprep.mubr.msk.f32.mxu1 %vm58_vm0, %v7181_v38 }
 0x119   :  { %v7336_v16 = vpack.c.bf16 %v6118_v12, %v371_v14  ;;  %6692 = vmatprep.subr.bf16.mxu0 %v7201_v49  ;;  %v6167_v18 = vpop.f32.mrb[28].mxu1 }
 0x11a   :  { %v588_v20 = vpop.f32.mrb[29].mxu1 }
 0x11b   :  { %6688 = vmatprep.subr.bf16.mxu1 %v7336_v16  ;;  %6274 = vmatmul.mubr.msk.f32.vlgmr.msra.gmra.mrb[46].mxu0 %vm58_vm0, %v7194_v44  ;;  %v7347_v22 = vpack.c.bf16 %v6167_v18, %v588_v20 }
 0x11c   :  { %6690 = vmatpush3.bf16.msra.mxu1 %v7336_v16  ;;  %6694 = vmatpush3.bf16.msra.mxu0 %v7201_v49 }
 0x11d   :  { %6287 = vmatprep.mubr.msk.f32.mxu0 %vm58_vm0, %v7342_v19  ;;  %6696 = vmatprep.subr.bf16.mxu1 %v7211_v55  ;;  %v6170_v25 = vpop.f32.mrb[30].mxu1 }
 0x11e   :  { %6700 = vmatprep.subr.bf16.mxu0 %v7221_v61  ;;  %v598_v26 = vpop.f32.mrb[31].mxu1 }
 0x11f   :  { %6281 = vmatmul.mubr.msk.f32.vlgmr.msra.gmra.mrb[46].mxu1 %vm58_vm0, %v7194_v44  ;;  %6288 = vmatmul.mubr.msk.f32.vlgmr.msra.gmra.mrb[48].mxu0 %vm58_vm0, %v7354_v24  ;;  %v7364_v28 = vpack.c.bf16 %v6170_v25, %v598_v26 }
 0x120   :  { %6698 = vmatpush3.bf16.msra.mxu1 %v7211_v55  ;;  %6702 = vmatpush3.bf16.msra.mxu0 %v7221_v61 }
 0x121   :  { %6294 = vmatprep.mubr.msk.f32.mxu1 %vm58_vm0, %v7342_v19  ;;  %6301 = vmatprep.mubr.msk.f32.mxu0 %vm58_vm0, %v7342_v19 }
 0x122   :  { %6704 = vmatprep.subr.bf16.mxu1 %v7231_v3  ;;  %6708 = vmatprep.subr.bf16.mxu0 %v7241_v9 }
 0x123   :  { %6295 = vmatmul.mubr.msk.f32.vlgmr.msra.gmra.mrb[48].mxu1 %vm58_vm0, %v7354_v24  ;;  %6302 = vmatmul.mubr.msk.f32.vlgmr.msra.gmra.mrb[50].mxu0 %vm58_vm0, %v7354_v24 }
 0x124   :  { %6706 = vmatpush3.bf16.msra.mxu1 %v7231_v3  ;;  %6710 = vmatpush3.bf16.msra.mxu0 %v7241_v9 }
 0x125   :  { %6308 = vmatprep.mubr.msk.f32.mxu1 %vm58_vm0, %v7342_v19  ;;  %6315 = vmatprep.mubr.msk.f32.mxu0 %vm58_vm0, %v7342_v19 }
 0x126   :  { %6712 = vmatprep.subr.bf16.mxu1 %v7251_v15  ;;  %6716 = vmatprep.subr.bf16.mxu0 %v7261_v21 }
 0x127   :  { %6309 = vmatmul.mubr.msk.f32.vlgmr.msra.gmra.mrb[50].mxu1 %vm58_vm0, %v7354_v24  ;;  %6316 = vmatmul.mubr.msk.f32.vlgmr.msra.gmra.mrb[52].mxu0 %vm58_vm0, %v7354_v24 }
 0x128   :  { %6714 = vmatpush3.bf16.msra.mxu1 %v7251_v15  ;;  %6718 = vmatpush3.bf16.msra.mxu0 %v7261_v21 }
 0x129   :  { %6322 = vmatprep.mubr.msk.f32.mxu1 %vm58_vm0, %v7342_v19  ;;  %6329 = vmatprep.mubr.msk.f32.mxu0 %vm58_vm0, %v7342_v19 }
 0x12a   :  { %6720 = vmatprep.subr.bf16.mxu1 %v7271_v27  ;;  %6724 = vmatprep.subr.bf16.mxu0 %v7281_v33 }
 0x12b   :  { %6323 = vmatmul.mubr.msk.f32.vlgmr.msra.gmra.mrb[52].mxu1 %vm58_vm0, %v7354_v24  ;;  %6330 = vmatmul.mubr.msk.f32.vlgmr.msra.gmra.mrb[54].mxu0 %vm58_vm0, %v7354_v24 }
 0x12c   :  { %6722 = vmatpush3.bf16.msra.mxu1 %v7271_v27  ;;  %6726 = vmatpush3.bf16.msra.mxu0 %v7281_v33 }
 0x12d   :  { %6336 = vmatprep.mubr.msk.f32.mxu1 %vm58_vm0, %v7342_v19  ;;  %6343 = vmatprep.mubr.msk.f32.mxu0 %vm58_vm0, %v7342_v19 }
 0x12e   :  { %6728 = vmatprep.subr.bf16.mxu1 %v7291_v40  ;;  %6732 = vmatprep.subr.bf16.mxu0 %v7301_v50 }
 0x12f   :  { %6337 = vmatmul.mubr.msk.f32.vlgmr.msra.gmra.mrb[54].mxu1 %vm58_vm0, %v7354_v24  ;;  %6344 = vmatmul.mubr.msk.f32.vlgmr.msra.gmra.mrb[56].mxu0 %vm58_vm0, %v7354_v24 }
 0x130   :  { %6730 = vmatpush3.bf16.msra.mxu1 %v7291_v40  ;;  %6734 = vmatpush3.bf16.msra.mxu0 %v7301_v50 }
 0x131   :  { %6350 = vmatprep.mubr.msk.f32.mxu1 %vm58_vm0, %v7342_v19  ;;  %6357 = vmatprep.mubr.msk.f32.mxu0 %vm58_vm0, %v7342_v19 }
 0x132   :  { %6736 = vmatprep.subr.bf16.mxu1 %v7311_v59  ;;  %6740 = vmatprep.subr.bf16.mxu0 %v7321_v4 }
 0x133   :  { %6351 = vmatmul.mubr.msk.f32.vlgmr.msra.gmra.mrb[56].mxu1 %vm58_vm0, %v7354_v24  ;;  %6358 = vmatmul.mubr.msk.f32.vlgmr.msra.gmra.mrb[58].mxu0 %vm58_vm0, %v7354_v24 }
 0x134   :  { %6738 = vmatpush3.bf16.msra.mxu1 %v7311_v59  ;;  %6742 = vmatpush3.bf16.msra.mxu0 %v7321_v4 }
 0x135   :  { %6364 = vmatprep.mubr.msk.f32.mxu1 %vm58_vm0, %v7342_v19  ;;  %6371 = vmatprep.mubr.msk.f32.mxu0 %vm58_vm0, %v7342_v19 }
 0x136   :  { %6744 = vmatprep.subr.bf16.mxu1 %v7331_v13  ;;  %6748 = vmatprep.subr.bf16.mxu0 %v7347_v22 }
 0x137   :  { %6365 = vmatmul.mubr.msk.f32.vlgmr.msra.gmra.mrb[58].mxu1 %vm58_vm0, %v7354_v24  ;;  %6372 = vmatmul.mubr.msk.f32.vlgmr.msra.gmra.mrb[60].mxu0 %vm58_vm0, %v7354_v24 }
 0x138   :  { %6746 = vmatpush3.bf16.msra.mxu1 %v7331_v13  ;;  %6750 = vmatpush3.bf16.msra.mxu0 %v7347_v22 }
 0x139   :  { %6756 = vmatprep.subr.bf16.mxu0 %v7201_v49  ;;  %6378 = vmatprep.mubr.msk.f32.mxu1 %vm58_vm0, %v7342_v19 }
 0x13a   :  { %6385 = vmatprep.mubr.msk.f32.mxu0 %vm58_vm0, %v7342_v19  ;;  %6752 = vmatprep.subr.bf16.mxu1 %v7364_v28 }
 0x13b   :  { %6379 = vmatmul.mubr.msk.f32.vlgmr.msra.gmra.mrb[60].mxu1 %vm58_vm0, %v7354_v24  ;;  %6386 = vmatmul.mubr.msk.f32.vlgmr.msra.gmra.mrb[62].mxu0 %vm58_vm0, %v7354_v24 }
 0x13c   :  { %6754 = vmatpush3.bf16.msra.mxu1 %v7364_v28  ;;  %6758 = vmatpush3.bf16.msra.mxu0 %v7201_v49 }
 0x13d   :  { %6760 = vmatprep.subr.bf16.mxu1 %v7211_v55  ;;  %6764 = vmatprep.subr.bf16.mxu0 %v7221_v61 }
 0x13e   :  { %6392 = vmatprep.mubr.msk.f32.mxu1 %vm58_vm0, %v7342_v19  ;;  %6399 = vmatprep.mubr.msk.f32.mxu0 %vm58_vm0, %v7181_v38 }
 0x13f   :  { %6393 = vmatmul.mubr.msk.f32.vlgmr.msra.gmra.mrb[62].mxu1 %vm58_vm0, %v7354_v24  ;;  %6400 = vmatmul.mubr.msk.f32.vlgmr.msra.gmra.mrb[64].mxu0 %vm58_vm0, %v7194_v44 }
 0x140   :  { %6762 = vmatpush3.bf16.msra.mxu1 %v7211_v55  ;;  %6766 = vmatpush3.bf16.msra.mxu0 %v7221_v61 }
 0x141   :  { %6768 = vmatprep.subr.bf16.mxu1 %v7231_v3  ;;  %6772 = vmatprep.subr.bf16.mxu0 %v7241_v9 }
 0x142   :  { %6406 = vmatprep.mubr.msk.f32.mxu1 %vm58_vm0, %v7181_v38  ;;  %6413 = vmatprep.mubr.msk.f32.mxu0 %vm58_vm0, %v7181_v38 }
 0x143   :  { %6407 = vmatmul.mubr.msk.f32.vlgmr.msra.gmra.mrb[64].mxu1 %vm58_vm0, %v7194_v44  ;;  %6414 = vmatmul.mubr.msk.f32.vlgmr.msra.gmra.mrb[66].mxu0 %vm58_vm0, %v7194_v44 }
 0x144   :  { %6770 = vmatpush3.bf16.msra.mxu1 %v7231_v3  ;;  %6774 = vmatpush3.bf16.msra.mxu0 %v7241_v9 }
 0x145   :  { %6776 = vmatprep.subr.bf16.mxu1 %v7251_v15  ;;  %6780 = vmatprep.subr.bf16.mxu0 %v7261_v21 }
 0x146   :  { %6420 = vmatprep.mubr.msk.f32.mxu1 %vm58_vm0, %v7181_v38  ;;  %6427 = vmatprep.mubr.msk.f32.mxu0 %vm58_vm0, %v7181_v38 }
 0x147   :  { %6421 = vmatmul.mubr.msk.f32.vlgmr.msra.gmra.mrb[66].mxu1 %vm58_vm0, %v7194_v44  ;;  %6428 = vmatmul.mubr.msk.f32.vlgmr.msra.gmra.mrb[68].mxu0 %vm58_vm0, %v7194_v44 }
 0x148   :  { %6778 = vmatpush3.bf16.msra.mxu1 %v7251_v15  ;;  %6782 = vmatpush3.bf16.msra.mxu0 %v7261_v21 }
 0x149   :  { %6784 = vmatprep.subr.bf16.mxu1 %v7271_v27  ;;  %6788 = vmatprep.subr.bf16.mxu0 %v7281_v33 }
 0x14a   :  { %6434 = vmatprep.mubr.msk.f32.mxu1 %vm58_vm0, %v7181_v38  ;;  %6441 = vmatprep.mubr.msk.f32.mxu0 %vm58_vm0, %v7181_v38 }
 0x14b   :  { %6435 = vmatmul.mubr.msk.f32.vlgmr.msra.gmra.mrb[68].mxu1 %vm58_vm0, %v7194_v44  ;;  %6442 = vmatmul.mubr.msk.f32.vlgmr.msra.gmra.mrb[70].mxu0 %vm58_vm0, %v7194_v44 }
 0x14c   :  { %6786 = vmatpush3.bf16.msra.mxu1 %v7271_v27  ;;  %6790 = vmatpush3.bf16.msra.mxu0 %v7281_v33 }
 0x14d   :  { %6792 = vmatprep.subr.bf16.mxu1 %v7291_v40  ;;  %6796 = vmatprep.subr.bf16.mxu0 %v7301_v50 }
 0x14e   :  { %6448 = vmatprep.mubr.msk.f32.mxu1 %vm58_vm0, %v7181_v38  ;;  %6455 = vmatprep.mubr.msk.f32.mxu0 %vm58_vm0, %v7181_v38 }
 0x14f   :  { %6449 = vmatmul.mubr.msk.f32.vlgmr.msra.gmra.mrb[70].mxu1 %vm58_vm0, %v7194_v44  ;;  %6456 = vmatmul.mubr.msk.f32.vlgmr.msra.gmra.mrb[72].mxu0 %vm58_vm0, %v7194_v44 }
 0x150   :  { %6794 = vmatpush3.bf16.msra.mxu1 %v7291_v40  ;;  %6798 = vmatpush3.bf16.msra.mxu0 %v7301_v50 }
 0x151   :  { %6800 = vmatprep.subr.bf16.mxu1 %v7311_v59  ;;  %6804 = vmatprep.subr.bf16.mxu0 %v7321_v4 }
 0x152   :  { %6462 = vmatprep.mubr.msk.f32.mxu1 %vm58_vm0, %v7181_v38  ;;  %6469 = vmatprep.mubr.msk.f32.mxu0 %vm58_vm0, %v7181_v38 }
 0x153   :  { %6463 = vmatmul.mubr.msk.f32.vlgmr.msra.gmra.mrb[72].mxu1 %vm58_vm0, %v7194_v44  ;;  %6470 = vmatmul.mubr.msk.f32.vlgmr.msra.gmra.mrb[74].mxu0 %vm58_vm0, %v7194_v44 }
 0x154   :  { %6802 = vmatpush3.bf16.msra.mxu1 %v7311_v59  ;;  %6806 = vmatpush3.bf16.msra.mxu0 %v7321_v4 }
 0x155   :  { %6808 = vmatprep.subr.bf16.mxu1 %v7331_v13  ;;  %6476 = vmatprep.mubr.msk.f32.mxu1 %vm58_vm0, %v7181_v38 }
 0x156   :  { %6812 = vmatprep.subr.bf16.mxu0 %v7347_v22  ;;  %6483 = vmatprep.mubr.msk.f32.mxu0 %vm58_vm0, %v7181_v38 }
 0x157   :  { %6477 = vmatmul.mubr.msk.f32.vlgmr.msra.gmra.mrb[74].mxu1 %vm58_vm0, %v7194_v44  ;;  %6484 = vmatmul.mubr.msk.f32.vlgmr.msra.gmra.mrb[76].mxu0 %vm58_vm0, %v7194_v44 }
 0x158   :  { %6810 = vmatpush3.bf16.msra.mxu1 %v7331_v13  ;;  %6814 = vmatpush3.bf16.msra.mxu0 %v7347_v22 }
 0x159   :  { %6820 = vmatprep.subr.bf16.mxu0 %v7187_v41  ;;  %6490 = vmatprep.mubr.msk.f32.mxu1 %vm58_vm0, %v7181_v38 }
 0x15a   :  { %6816 = vmatprep.subr.bf16.mxu1 %v7364_v28  ;;  %6497 = vmatprep.mubr.msk.f32.mxu0 %vm58_vm0, %v7181_v38 }
 0x15b   :  { %6491 = vmatmul.mubr.msk.f32.vlgmr.msra.gmra.mrb[76].mxu1 %vm58_vm0, %v7194_v44  ;;  %6498 = vmatmul.mubr.msk.f32.vlgmr.msra.gmra.mrb[78].mxu0 %vm58_vm0, %v7194_v44 }
 0x15c   :  { %6818 = vmatpush3.bf16.msra.mxu1 %v7364_v28  ;;  %6822 = vmatpush3.bf16.msra.mxu0 %v7187_v41 }
 0x15d   :  { %6824 = vmatprep.subr.bf16.mxu1 %v7196_v45  ;;  %6828 = vmatprep.subr.bf16.mxu0 %v7206_v51 }
 0x15e   :  { %6504 = vmatprep.mubr.msk.f32.mxu1 %vm58_vm0, %v7181_v38  ;;  %6511 = vmatprep.mubr.msk.f32.mxu0 %vm58_vm0, %v7342_v19 }
 0x15f   :  { %6505 = vmatmul.mubr.msk.f32.vlgmr.msra.gmra.mrb[78].mxu1 %vm58_vm0, %v7194_v44  ;;  %6512 = vmatmul.mubr.msk.f32.vlgmr.msra.gmra.mrb[64].mxu0 %vm58_vm0, %v7354_v24 }
 0x160   :  { %6826 = vmatpush3.bf16.msra.mxu1 %v7196_v45  ;;  %6830 = vmatpush3.bf16.msra.mxu0 %v7206_v51 }
 0x161   :  { %6832 = vmatprep.subr.bf16.mxu1 %v7216_v57  ;;  %6836 = vmatprep.subr.bf16.mxu0 %v7226_v63 }
 0x162   :  { %6518 = vmatprep.mubr.msk.f32.mxu1 %vm58_vm0, %v7342_v19  ;;  %6525 = vmatprep.mubr.msk.f32.mxu0 %vm58_vm0, %v7342_v19 }
 0x163   :  { %6519 = vmatmul.mubr.msk.f32.vlgmr.msra.gmra.mrb[64].mxu1 %vm58_vm0, %v7354_v24  ;;  %6526 = vmatmul.mubr.msk.f32.vlgmr.msra.gmra.mrb[66].mxu0 %vm58_vm0, %v7354_v24 }
 0x164   :  { %6834 = vmatpush3.bf16.msra.mxu1 %v7216_v57  ;;  %6838 = vmatpush3.bf16.msra.mxu0 %v7226_v63 }
 0x165   :  { %6840 = vmatprep.subr.bf16.mxu1 %v7236_v5  ;;  %6844 = vmatprep.subr.bf16.mxu0 %v7246_v11 }
 0x166   :  { %6532 = vmatprep.mubr.msk.f32.mxu1 %vm58_vm0, %v7342_v19  ;;  %6539 = vmatprep.mubr.msk.f32.mxu0 %vm58_vm0, %v7342_v19 }
 0x167   :  { %6533 = vmatmul.mubr.msk.f32.vlgmr.msra.gmra.mrb[66].mxu1 %vm58_vm0, %v7354_v24  ;;  %6540 = vmatmul.mubr.msk.f32.vlgmr.msra.gmra.mrb[68].mxu0 %vm58_vm0, %v7354_v24 }
 0x168   :  { %6842 = vmatpush3.bf16.msra.mxu1 %v7236_v5  ;;  %6846 = vmatpush3.bf16.msra.mxu0 %v7246_v11 }
 0x169   :  { %6848 = vmatprep.subr.bf16.mxu1 %v7256_v17  ;;  %6852 = vmatprep.subr.bf16.mxu0 %v7266_v23 }
 0x16a   :  { %6546 = vmatprep.mubr.msk.f32.mxu1 %vm58_vm0, %v7342_v19  ;;  %6553 = vmatprep.mubr.msk.f32.mxu0 %vm58_vm0, %v7342_v19 }
 0x16b   :  { %6547 = vmatmul.mubr.msk.f32.vlgmr.msra.gmra.mrb[68].mxu1 %vm58_vm0, %v7354_v24  ;;  %6554 = vmatmul.mubr.msk.f32.vlgmr.msra.gmra.mrb[70].mxu0 %vm58_vm0, %v7354_v24 }
 0x16c   :  { %6850 = vmatpush3.bf16.msra.mxu1 %v7256_v17  ;;  %6854 = vmatpush3.bf16.msra.mxu0 %v7266_v23 }
 0x16d   :  { %6856 = vmatprep.subr.bf16.mxu1 %v7276_v29  ;;  %6860 = vmatprep.subr.bf16.mxu0 %v7286_v35 }
 0x16e   :  { %6560 = vmatprep.mubr.msk.f32.mxu1 %vm58_vm0, %v7342_v19  ;;  %6567 = vmatprep.mubr.msk.f32.mxu0 %vm58_vm0, %v7342_v19 }
 0x16f   :  { %6561 = vmatmul.mubr.msk.f32.vlgmr.msra.gmra.mrb[70].mxu1 %vm58_vm0, %v7354_v24  ;;  %6568 = vmatmul.mubr.msk.f32.vlgmr.msra.gmra.mrb[72].mxu0 %vm58_vm0, %v7354_v24 }
 0x170   :  { %6858 = vmatpush3.bf16.msra.mxu1 %v7276_v29  ;;  %6862 = vmatpush3.bf16.msra.mxu0 %v7286_v35 }
 0x171   :  { %6864 = vmatprep.subr.bf16.mxu1 %v7296_v43  ;;  %6868 = vmatprep.subr.bf16.mxu0 %v7306_v53 }
 0x172   :  { %6574 = vmatprep.mubr.msk.f32.mxu1 %vm58_vm0, %v7342_v19  ;;  %6581 = vmatprep.mubr.msk.f32.mxu0 %vm58_vm0, %v7342_v19 }
 0x173   :  { %6575 = vmatmul.mubr.msk.f32.vlgmr.msra.gmra.mrb[72].mxu1 %vm58_vm0, %v7354_v24  ;;  %6582 = vmatmul.mubr.msk.f32.vlgmr.msra.gmra.mrb[74].mxu0 %vm58_vm0, %v7354_v24 }
 0x174   :  { %6866 = vmatpush3.bf16.msra.mxu1 %v7296_v43  ;;  %6870 = vmatpush3.bf16.msra.mxu0 %v7306_v53 }
 0x175   :  { %6872 = vmatprep.subr.bf16.mxu1 %v7316_v62  ;;  %6876 = vmatprep.subr.bf16.mxu0 %v7326_v7 }
 0x176   :  { %6588 = vmatprep.mubr.msk.f32.mxu1 %vm58_vm0, %v7342_v19  ;;  %6595 = vmatprep.mubr.msk.f32.mxu0 %vm58_vm0, %v7342_v19 }
 0x177   :  { %6589 = vmatmul.mubr.msk.f32.vlgmr.msra.gmra.mrb[74].mxu1 %vm58_vm0, %v7354_v24  ;;  %6596 = vmatmul.mubr.msk.f32.vlgmr.msra.gmra.mrb[76].mxu0 %vm58_vm0, %v7354_v24 }
 0x178   :  { %6874 = vmatpush3.bf16.msra.mxu1 %v7316_v62  ;;  %6878 = vmatpush3.bf16.msra.mxu0 %v7326_v7 }
 0x179   :  { %6880 = vmatprep.subr.bf16.mxu1 %v7336_v16  ;;  %6602 = vmatprep.mubr.msk.f32.mxu1 %vm58_vm0, %v7342_v19 }
 0x17a   :  { %6609 = vmatprep.mubr.msk.f32.mxu0 %vm58_vm0, %v7342_v19 }
 0x17b   :  { %6603 = vmatmul.mubr.msk.f32.vlgmr.msra.gmra.mrb[76].mxu1 %vm58_vm0, %v7354_v24  ;;  %6610 = vmatmul.mubr.msk.f32.vlgmr.msra.gmra.mrb[78].mxu0 %vm58_vm0, %v7354_v24 }
 0x17c   :  { %6882 = vmatpush3.bf16.msra.mxu1 %v7336_v16  ;;  %6616 = vmatprep.mubr.msk.f32.mxu1 %vm58_vm0, %v7342_v19 }
 0x17f   :  { %6617 = vmatmul.mubr.msk.f32.vlgmr.msra.gmra.mrb[78].mxu1 %vm58_vm0, %v7354_v24 }
 0x1b6   :  { %v6177_v38 = vpop.f32.mrb[32].mxu0 }
 0x1b7   :  { %v683_v41 = vpop.f32.mrb[33].mxu0 }
 0x1ba   :  { %v6184_v44 = vpop.f32.mrb[32].mxu1 }
 0x1bb   :  { %v758_v45 = vpop.f32.mrb[33].mxu1 }
 0x1be   :  { %v6191_v49 = vpop.f32.mrb[34].mxu0 }
 0x1bf   :  { %v833_v51 = vpop.f32.mrb[35].mxu0 }
 0x1c2   :  { %v6198_v55 = vpop.f32.mrb[34].mxu1 }
 0x1c3   :  { %v908_v57 = vpop.f32.mrb[35].mxu1 }
 0x1c6   :  { %v6205_v61 = vpop.f32.mrb[36].mxu0 }
 0x1c7   :  { %v983_v63 = vpop.f32.mrb[37].mxu0 }
 0x1ca   :  { %v6212_v3 = vpop.f32.mrb[36].mxu1 }
 0x1cb   :  { %v1058_v5 = vpop.f32.mrb[37].mxu1 }
 0x1ce   :  { %v6219_v9 = vpop.f32.mrb[38].mxu0 }
 0x1cf   :  { %v1133_v11 = vpop.f32.mrb[39].mxu0 }
 0x1d2   :  { %v7646_v15 = vpop.f32.mrb[38].mxu1 }
 0x1d3   :  { %v7648_v17 = vpop.f32.mrb[39].mxu1 }
 0x1d6   :  { %v7650_v21 = vpop.f32.mrb[40].mxu0 }
 0x1d7   :  { %v7652_v23 = vpop.f32.mrb[41].mxu0 }
 0x1da   :  { %v7654_v27 = vpop.f32.mrb[40].mxu1 }
 0x1db   :  { %v7656_v29 = vpop.f32.mrb[41].mxu1 }
 0x1de   :  { %v7658_v30 = vpop.f32.mrb[42].mxu0 }
 0x1df   :  { %v7660_v31 = vpop.f32.mrb[43].mxu0 }
 0x1e2   :  { %v7662_v32 = vpop.f32.mrb[42].mxu1 }
 0x1e3   :  { %v7664_v33 = vpop.f32.mrb[43].mxu1 }
 0x1e6   :  { %v7666_v34 = vpop.f32.mrb[44].mxu0 }
 0x1e7   :  { %v7668_v35 = vpop.f32.mrb[45].mxu0 }
 0x1ea   :  { %v7670_v36 = vpop.f32.mrb[44].mxu1 }
 0x1eb   :  { %v7672_v37 = vpop.f32.mrb[45].mxu1 }
 0x1ee   :  { %v7674_v39 = vpop.f32.mrb[46].mxu0 }
 0x1ef   :  { %v7676_v40 = vpop.f32.mrb[47].mxu0 }
 0x1f2   :  { %v7678_v42 = vpop.f32.mrb[46].mxu1  ;;  %v6289_v43 = vpop.f32.mrb[48].mxu0 }
 0x1f3   :  { %v7680_v46 = vpop.f32.mrb[47].mxu1  ;;  %v3024_v47 = vsub.f32 %v6177_v38, %v6289_v43  ;;  %v1889_v48 = vpop.f32.mrb[49].mxu0 }
 0x1f4   :  { %v3023_v50 = vsub.f32 %v683_v41, %v1889_v48 }
 0x1f5   :  { %3056 = vst.msk [vmem:[#allocation2 + $0x8] sm:$0xff] %vm58_vm0, %v3024_v47 }
 0x1f6   :  { %v6296_v52 = vpop.f32.mrb[48].mxu1  ;;  %3055 = vst.msk [vmem:[#allocation2] sm:$0xff] %vm58_vm0, %v3023_v50  ;;  %v6303_v53 = vpop.f32.mrb[50].mxu0 }
 0x1f7   :  { %v3026_v54 = vsub.f32 %v6184_v44, %v6296_v52  ;;  %v1964_v56 = vpop.f32.mrb[49].mxu1  ;;  %v3028_v58 = vsub.f32 %v6191_v49, %v6303_v53  ;;  %v2039_v59 = vpop.f32.mrb[51].mxu0 }
 0x1f8   :  { %v3025_v60 = vsub.f32 %v758_v45, %v1964_v56  ;;  %v3027_v62 = vsub.f32 %v833_v51, %v2039_v59 }
 0x1f9   :  { %3058 = vst.msk [vmem:[#allocation2 + $0x18] sm:$0xff] %vm58_vm0, %v3026_v54  ;;  %3060 = vst.msk [vmem:[#allocation2 + $0x28] sm:$0xff] %vm58_vm0, %v3028_v58 }
 0x1fa   :  { %3057 = vst.msk [vmem:[#allocation2 + $0x10] sm:$0xff] %vm58_vm0, %v3025_v60  ;;  %v6310_v0 = vpop.f32.mrb[50].mxu1  ;;  %3059 = vst.msk [vmem:[#allocation2 + $0x20] sm:$0xff] %vm58_vm0, %v3027_v62  ;;  %v6317_v1 = vpop.f32.mrb[52].mxu0 }
 0x1fb   :  { %v3030_v2 = vsub.f32 %v6198_v55, %v6310_v0  ;;  %v2114_v4 = vpop.f32.mrb[51].mxu1  ;;  %v3032_v6 = vsub.f32 %v6205_v61, %v6317_v1  ;;  %v2189_v7 = vpop.f32.mrb[53].mxu0 }
 0x1fc   :  { %v3029_v8 = vsub.f32 %v908_v57, %v2114_v4  ;;  %v3031_v10 = vsub.f32 %v983_v63, %v2189_v7 }
 0x1fd   :  { %3062 = vst.msk [vmem:[#allocation2 + $0x38] sm:$0xff] %vm58_vm0, %v3030_v2  ;;  %3064 = vst.msk [vmem:[#allocation2 + $0x48] sm:$0xff] %vm58_vm0, %v3032_v6 }
 0x1fe   :  { %3061 = vst.msk [vmem:[#allocation2 + $0x30] sm:$0xff] %vm58_vm0, %v3029_v8  ;;  %v6324_v12 = vpop.f32.mrb[52].mxu1  ;;  %3063 = vst.msk [vmem:[#allocation2 + $0x40] sm:$0xff] %vm58_vm0, %v3031_v10  ;;  %v6331_v13 = vpop.f32.mrb[54].mxu0 }
 0x1ff   :  { %v3034_v14 = vsub.f32 %v6212_v3, %v6324_v12  ;;  %v2264_v16 = vpop.f32.mrb[53].mxu1  ;;  %v3036_v18 = vsub.f32 %v6219_v9, %v6331_v13  ;;  %v2339_v19 = vpop.f32.mrb[55].mxu0 }
 0x200   :  { %v3033_v20 = vsub.f32 %v1058_v5, %v2264_v16  ;;  %v3035_v22 = vsub.f32 %v1133_v11, %v2339_v19 }
 0x201   :  { %3066 = vst.msk [vmem:[#allocation2 + $0x58] sm:$0xff] %vm58_vm0, %v3034_v14  ;;  %3068 = vst.msk [vmem:[#allocation2 + $0x68] sm:$0xff] %vm58_vm0, %v3036_v18 }
 0x202   :  { %3065 = vst.msk [vmem:[#allocation2 + $0x50] sm:$0xff] %vm58_vm0, %v3033_v20  ;;  %v6338_v24 = vpop.f32.mrb[54].mxu1  ;;  %3067 = vst.msk [vmem:[#allocation2 + $0x60] sm:$0xff] %vm58_vm0, %v3035_v22  ;;  %v6345_v25 = vpop.f32.mrb[56].mxu0 }
 0x203   :  { %v3038_v26 = vsub.f32 %v7646_v15, %v6338_v24  ;;  %v2414_v28 = vpop.f32.mrb[55].mxu1  ;;  %v3040_v38 = vsub.f32 %v7650_v21, %v6345_v25  ;;  %v2489_v41 = vpop.f32.mrb[57].mxu0 }
 0x204   :  { %v3037_v44 = vsub.f32 %v7648_v17, %v2414_v28  ;;  %v3039_v45 = vsub.f32 %v7652_v23, %v2489_v41 }
 0x205   :  { %3070 = vst.msk [vmem:[#allocation2 + $0x78] sm:$0xff] %vm58_vm0, %v3038_v26  ;;  %3072 = vst.msk [vmem:[#allocation2 + $0x88] sm:$0xff] %vm58_vm0, %v3040_v38 }
 0x206   :  { %3069 = vst.msk [vmem:[#allocation2 + $0x70] sm:$0xff] %vm58_vm0, %v3037_v44  ;;  %v6352_v49 = vpop.f32.mrb[56].mxu1  ;;  %3071 = vst.msk [vmem:[#allocation2 + $0x80] sm:$0xff] %vm58_vm0, %v3039_v45  ;;  %v6359_v51 = vpop.f32.mrb[58].mxu0 }
 0x207   :  { %v3042_v55 = vsub.f32 %v7654_v27, %v6352_v49  ;;  %v2564_v57 = vpop.f32.mrb[57].mxu1  ;;  %v3044_v61 = vsub.f32 %v7658_v30, %v6359_v51  ;;  %v2639_v63 = vpop.f32.mrb[59].mxu0 }
 0x208   :  { %v3041_v3 = vsub.f32 %v7656_v29, %v2564_v57  ;;  %v3043_v5 = vsub.f32 %v7660_v31, %v2639_v63 }
 0x209   :  { %3074 = vst.msk [vmem:[#allocation2 + $0x98] sm:$0xff] %vm58_vm0, %v3042_v55  ;;  %3076 = vst.msk [vmem:[#allocation2 + $0xa8] sm:$0xff] %vm58_vm0, %v3044_v61 }
 0x20a   :  { %3073 = vst.msk [vmem:[#allocation2 + $0x90] sm:$0xff] %vm58_vm0, %v3041_v3  ;;  %v6366_v9 = vpop.f32.mrb[58].mxu1  ;;  %3075 = vst.msk [vmem:[#allocation2 + $0xa0] sm:$0xff] %vm58_vm0, %v3043_v5  ;;  %v6373_v11 = vpop.f32.mrb[60].mxu0 }
 0x20b   :  { %v3046_v15 = vsub.f32 %v7662_v32, %v6366_v9  ;;  %v2714_v17 = vpop.f32.mrb[59].mxu1  ;;  %v3048_v21 = vsub.f32 %v7666_v34, %v6373_v11  ;;  %v2789_v23 = vpop.f32.mrb[61].mxu0 }
 0x20c   :  { %v3045_v27 = vsub.f32 %v7664_v33, %v2714_v17  ;;  %v3047_v29 = vsub.f32 %v7668_v35, %v2789_v23 }
 0x20d   :  { %3078 = vst.msk [vmem:[#allocation2 + $0xb8] sm:$0xff] %vm58_vm0, %v3046_v15  ;;  %3080 = vst.msk [vmem:[#allocation2 + $0xc8] sm:$0xff] %vm58_vm0, %v3048_v21 }
 0x20e   :  { %3077 = vst.msk [vmem:[#allocation2 + $0xb0] sm:$0xff] %vm58_vm0, %v3045_v27  ;;  %v6380_v30 = vpop.f32.mrb[60].mxu1  ;;  %3079 = vst.msk [vmem:[#allocation2 + $0xc0] sm:$0xff] %vm58_vm0, %v3047_v29  ;;  %v6387_v31 = vpop.f32.mrb[62].mxu0 }
 0x20f   :  { %v3050_v32 = vsub.f32 %v7670_v36, %v6380_v30  ;;  %v2864_v43 = vpop.f32.mrb[61].mxu1  ;;  %v3052_v34 = vsub.f32 %v7674_v39, %v6387_v31  ;;  %v2939_v47 = vpop.f32.mrb[63].mxu0 }
 0x210   :  { %v3049_v33 = vsub.f32 %v7672_v37, %v2864_v43  ;;  %v3051_v35 = vsub.f32 %v7676_v40, %v2939_v47 }
 0x211   :  { %3082 = vst.msk [vmem:[#allocation2 + $0xd8] sm:$0xff] %vm58_vm0, %v3050_v32  ;;  %3084 = vst.msk [vmem:[#allocation2 + $0xe8] sm:$0xff] %vm58_vm0, %v3052_v34 }
 0x212   :  { %3081 = vst.msk [vmem:[#allocation2 + $0xd0] sm:$0xff] %vm58_vm0, %v3049_v33  ;;  %v6394_v48 = vpop.f32.mrb[62].mxu1  ;;  %3083 = vst.msk [vmem:[#allocation2 + $0xe0] sm:$0xff] %vm58_vm0, %v3051_v35 }
 0x213   :  { %v3054_v36 = vsub.f32 %v7678_v42, %v6394_v48  ;;  %v3014_v50 = vpop.f32.mrb[63].mxu1 }
 0x214   :  { %v3053_v39 = vsub.f32 %v7680_v46, %v3014_v50 }
 0x215   :  { %3086 = vst.msk [vmem:[#allocation2 + $0xf8] sm:$0xff] %vm58_vm0, %v3054_v36 }
 0x216   :  { %3085 = vst.msk [vmem:[#allocation2 + $0xf0] sm:$0xff] %vm58_vm0, %v3053_v39 }
 0x217   :  { %6930 = shalt.err (!%p6927_p4)
}
 0x218   :  { %s6931_s25 = scalar_lea.hbm %s7799_s5, 4096 }
 0x219   :  { %p6932_p5 = scmp.ne.s32.totalorder %s7799_s5, %s6931_s25  ;;  %p6935_p6 = scmp.lt.u32.totalorder %s6931_s25, %s7799_s5 }
 0x21b   :  { %p6937_p7 = pnand %p6935_p6, %p6932_p5 }
 0x21d   :  { %6940 = shalt.err (!%p6937_p7)
}
 0x21e   :  { %s6968_s30 = smov 128   ;;  %s6969_s1 = smov 8  }
 0x21f   :  { %5530 = dma.vmem_to_hbm [thread:$0]  %s5525_s21, 4096, %s7799_s5, [#allocation3], %s6968_s30, %s6968_s30, %s6969_s1  }
 0x220   :  { %s6970_s5 = smov [#allocation4]  }
 0x221   :  { %s5536_s9 = sshll.u32 %s6970_s5, 4  ;;  %s5537_s9 = int_to_ptr.vmem [resolvable:$true] %s5536_s9 }
 0x222   :  { %s6941_s10 = scalar_lea.vmem %s5537_s9, 4096  ;;  %p6946_p9 = scmp.lt.s32.totalorder %s5537_s9, %s5537_s9 }
 0x223   :  { %p6942_p8 = scmp.ne.s32.totalorder %s5537_s9, %s6941_s10  ;;  %p6947_p10 = scmp.lt.s32.totalorder %s6941_s10, %s6941_s10 }
 0x225   :  { %p6948_p11 = por %p6947_p10, %p6946_p9 }
 0x227   :  { %p6949_p12 = pnand %p6948_p11, %p6942_p8 }
 0x232   :  { %v6513_v37 = vpop.f32.mrb[64].mxu0 }
 0x233   :  { %5488 = vst.msk [vmem:[#allocation4 + $0x8] sm:$0xff] %vm58_vm0, %v6513_v37  ;;  %v4353_v40 = vpop.f32.mrb[65].mxu0 }
 0x234   :  { %5487 = vst.msk [vmem:[#allocation4] sm:$0xff] %vm58_vm0, %v4353_v40 }
 0x236   :  { %v6520_v42 = vpop.f32.mrb[64].mxu1  ;;  %v6527_v46 = vpop.f32.mrb[66].mxu0 }
 0x237   :  { %5490 = vst.msk [vmem:[#allocation4 + $0x18] sm:$0xff] %vm58_vm0, %v6520_v42  ;;  %v4428_v52 = vpop.f32.mrb[65].mxu1  ;;  %5492 = vst.msk [vmem:[#allocation4 + $0x28] sm:$0xff] %vm58_vm0, %v6527_v46  ;;  %v4503_v53 = vpop.f32.mrb[67].mxu0 }
 0x238   :  { %5489 = vst.msk [vmem:[#allocation4 + $0x10] sm:$0xff] %vm58_vm0, %v4428_v52  ;;  %5491 = vst.msk [vmem:[#allocation4 + $0x20] sm:$0xff] %vm58_vm0, %v4503_v53 }
 0x23a   :  { %v6534_v54 = vpop.f32.mrb[66].mxu1  ;;  %v6541_v56 = vpop.f32.mrb[68].mxu0 }
 0x23b   :  { %5494 = vst.msk [vmem:[#allocation4 + $0x38] sm:$0xff] %vm58_vm0, %v6534_v54  ;;  %v4578_v58 = vpop.f32.mrb[67].mxu1  ;;  %5496 = vst.msk [vmem:[#allocation4 + $0x48] sm:$0xff] %vm58_vm0, %v6541_v56  ;;  %v4653_v59 = vpop.f32.mrb[69].mxu0 }
 0x23c   :  { %5493 = vst.msk [vmem:[#allocation4 + $0x30] sm:$0xff] %vm58_vm0, %v4578_v58  ;;  %5495 = vst.msk [vmem:[#allocation4 + $0x40] sm:$0xff] %vm58_vm0, %v4653_v59 }
 0x23e   :  { %v6548_v60 = vpop.f32.mrb[68].mxu1  ;;  %v6555_v62 = vpop.f32.mrb[70].mxu0 }
 0x23f   :  { %5498 = vst.msk [vmem:[#allocation4 + $0x58] sm:$0xff] %vm58_vm0, %v6548_v60  ;;  %v4728_v0 = vpop.f32.mrb[69].mxu1  ;;  %5500 = vst.msk [vmem:[#allocation4 + $0x68] sm:$0xff] %vm58_vm0, %v6555_v62  ;;  %v4803_v1 = vpop.f32.mrb[71].mxu0 }
 0x240   :  { %5497 = vst.msk [vmem:[#allocation4 + $0x50] sm:$0xff] %vm58_vm0, %v4728_v0  ;;  %5499 = vst.msk [vmem:[#allocation4 + $0x60] sm:$0xff] %vm58_vm0, %v4803_v1 }
 0x242   :  { %v6562_v2 = vpop.f32.mrb[70].mxu1  ;;  %v6569_v4 = vpop.f32.mrb[72].mxu0 }
 0x243   :  { %5502 = vst.msk [vmem:[#allocation4 + $0x78] sm:$0xff] %vm58_vm0, %v6562_v2  ;;  %v4878_v6 = vpop.f32.mrb[71].mxu1  ;;  %5504 = vst.msk [vmem:[#allocation4 + $0x88] sm:$0xff] %vm58_vm0, %v6569_v4  ;;  %v4953_v7 = vpop.f32.mrb[73].mxu0 }
 0x244   :  { %5501 = vst.msk [vmem:[#allocation4 + $0x70] sm:$0xff] %vm58_vm0, %v4878_v6  ;;  %5503 = vst.msk [vmem:[#allocation4 + $0x80] sm:$0xff] %vm58_vm0, %v4953_v7 }
 0x246   :  { %v6576_v8 = vpop.f32.mrb[72].mxu1  ;;  %v6583_v10 = vpop.f32.mrb[74].mxu0 }
 0x247   :  { %5506 = vst.msk [vmem:[#allocation4 + $0x98] sm:$0xff] %vm58_vm0, %v6576_v8  ;;  %v5028_v12 = vpop.f32.mrb[73].mxu1  ;;  %5508 = vst.msk [vmem:[#allocation4 + $0xa8] sm:$0xff] %vm58_vm0, %v6583_v10  ;;  %v5103_v13 = vpop.f32.mrb[75].mxu0 }
 0x248   :  { %5505 = vst.msk [vmem:[#allocation4 + $0x90] sm:$0xff] %vm58_vm0, %v5028_v12  ;;  %5507 = vst.msk [vmem:[#allocation4 + $0xa0] sm:$0xff] %vm58_vm0, %v5103_v13 }
 0x24a   :  { %v6590_v14 = vpop.f32.mrb[74].mxu1  ;;  %v6597_v16 = vpop.f32.mrb[76].mxu0 }
 0x24b   :  { %5510 = vst.msk [vmem:[#allocation4 + $0xb8] sm:$0xff] %vm58_vm0, %v6590_v14  ;;  %v5178_v18 = vpop.f32.mrb[75].mxu1  ;;  %5512 = vst.msk [vmem:[#allocation4 + $0xc8] sm:$0xff] %vm58_vm0, %v6597_v16  ;;  %v5253_v19 = vpop.f32.mrb[77].mxu0 }
 0x24c   :  { %5509 = vst.msk [vmem:[#allocation4 + $0xb0] sm:$0xff] %vm58_vm0, %v5178_v18  ;;  %5511 = vst.msk [vmem:[#allocation4 + $0xc0] sm:$0xff] %vm58_vm0, %v5253_v19 }
 0x24e   :  { %v6604_v20 = vpop.f32.mrb[76].mxu1  ;;  %v6611_v22 = vpop.f32.mrb[78].mxu0 }
 0x24f   :  { %5514 = vst.msk [vmem:[#allocation4 + $0xd8] sm:$0xff] %vm58_vm0, %v6604_v20  ;;  %v5328_v24 = vpop.f32.mrb[77].mxu1  ;;  %5516 = vst.msk [vmem:[#allocation4 + $0xe8] sm:$0xff] %vm58_vm0, %v6611_v22  ;;  %v5403_v25 = vpop.f32.mrb[79].mxu0 }
 0x250   :  { %5513 = vst.msk [vmem:[#allocation4 + $0xd0] sm:$0xff] %vm58_vm0, %v5328_v24  ;;  %5515 = vst.msk [vmem:[#allocation4 + $0xe0] sm:$0xff] %vm58_vm0, %v5403_v25 }
 0x252   :  { %v6618_v26 = vpop.f32.mrb[78].mxu1 }
 0x253   :  { %5518 = vst.msk [vmem:[#allocation4 + $0xf8] sm:$0xff] %vm58_vm0, %v6618_v26  ;;  %v5478_v28 = vpop.f32.mrb[79].mxu1 }
 0x254   :  { %5517 = vst.msk [vmem:[#allocation4 + $0xf0] sm:$0xff] %vm58_vm0, %v5478_v28 }
 0x255   :  { %6952 = shalt.err (!%p6949_p12)
}
 0x256   :  { %s6953_s13 = scalar_lea.hbm %s7800_s6, 4096 }
 0x257   :  { %p6954_p13 = scmp.ne.s32.totalorder %s7800_s6, %s6953_s13  ;;  %p6957_p0 = scmp.lt.u32.totalorder %s6953_s13, %s7800_s6 }
 0x259   :  { %p6959_p1 = pnand %p6957_p0, %p6954_p13 }
 0x25b   :  { %6962 = shalt.err (!%p6959_p1)
}
 0x25c   :  { %5542 = dma.vmem_to_hbm [thread:$0]  %s5537_s9, 4096, %s7800_s6, [#allocation5], %s6968_s30, %s6968_s30, %s6969_s1  }
 0x25d   :  { %6963 = dma.done.wait [#allocation3], 4096  }
 0x25e   :  { %6964 = vsyncadd [#allocation3], 4294963200 }
 0x25f   :  { %6965 = dma.done.wait [#allocation5], 4096  }
 0x260   :  { %6966 = vsyncadd [#allocation5], 4294963200 }
 0x261   :  { %5549 = vsyncpa [#allocation3], 1 }
 0x262   :  { %5550 = vsyncpa [#allocation5], 1 }

</bundles_post_ra>
